<compile_context>
chip_gen: v6e
topology: v6e:2x2x1
jax: 0.10.0
libtpu: 0.0.40
codegen_flags: <defaults>
</compile_context>

<pallas_src>
import jax
import jax.numpy as jnp
from jax.experimental import pallas as pl
from jax.experimental.pallas import tpu as pltpu


def _uw_kernel(l_ref, p_ref, out_ref):
    # l_ref:  (1, N) f32 in VMEM; per-task scalar losses.
    # p_ref:  (1, N) f32 in VMEM; uncertainty parameters sigma_i.
    # out_ref:(1, 1) f32 in SMEM; scalar total loss.
    l = l_ref[...]                                           # (1, N)
    p = p_ref[...]                                           # (1, N)
    p2 = p * p
    weighted = l * pl.reciprocal(2.0 * p2, approx=False)     # 0.5 / sigma^2 * L_i
    reg = jnp.log1p(p2)                                      # log(1 + sigma^2)
    out_ref[0, 0] = jnp.sum(weighted + reg)


@jax.jit
def uncertainty_weighted(losses_vec, params):
    """losses_vec: (num_losses,) f32 per-task scalar losses.
       params:     (num_losses,) f32 uncertainty parameters (init 1.0).
       Returns scalar total loss (f32)."""
    n = losses_vec.shape[0]
    l2d = losses_vec.astype(jnp.float32).reshape(1, n)   # free reshape, no copy
    p2d = params.astype(jnp.float32).reshape(1, n)

    out = pl.pallas_call(
        _uw_kernel,
        out_shape=jax.ShapeDtypeStruct((1, 1), jnp.float32),
        in_specs=[
            pl.BlockSpec(memory_space=pltpu.MemorySpace.VMEM),
            pl.BlockSpec(memory_space=pltpu.MemorySpace.VMEM),
        ],
        out_specs=pl.BlockSpec(memory_space=pltpu.MemorySpace.SMEM),
        cost_estimate=pl.CostEstimate(
            flops=6 * n,                # mul/mul/mul/add + reduce, per task
            transcendentals=2 * n,      # reciprocal + log1p, per task
            bytes_accessed=8 * n + 4,   # 2 f32 vectors in, 1 f32 scalar out
        ),
    )(l2d, p2d)
    return out[0, 0]


def _reference(losses_vec, params):
    p2 = params.astype(jnp.float32) ** 2
    return jnp.sum(0.5 / p2 * losses_vec.astype(jnp.float32) + jnp.log1p(p2))


if __name__ == "__main__":
    key = jax.random.PRNGKey(0)
    num_losses = 4
    k_loss, k_param = jax.random.split(key)

    # Synthetic per-task scalar losses (e.g. outputs of 4 task heads).
    losses_vec = jax.random.uniform(
        k_loss, (num_losses,), dtype=jnp.float32, minval=0.1, maxval=2.0)

    # Case 1: parameter init matching the module's reset_parameters (fill_(1.0)).
    params_init = jnp.ones((num_losses,), dtype=jnp.float32)
    total = jax.block_until_ready(uncertainty_weighted(losses_vec, params_init))
    ref = _reference(losses_vec, params_init)
    assert jnp.allclose(total, ref, rtol=1e-5, atol=1e-5), (total, ref)

    # Case 2: non-trivial (post-training-like) params.
    params_rand = jax.random.uniform(
        k_param, (num_losses,), dtype=jnp.float32, minval=0.5, maxval=1.5)
    total2 = jax.block_until_ready(uncertainty_weighted(losses_vec, params_rand))
    ref2 = _reference(losses_vec, params_rand)
    assert jnp.allclose(total2, ref2, rtol=1e-5, atol=1e-5), (total2, ref2)

    print("KERNEL_OK")
</pallas_src>

<mosaic_0001>
module attributes {stable_mosaic.version = 11 : i64} {
  func.func @_uw_kernel(%arg0: memref<1x4xf32, #tpu.memory_space<vmem>>, %arg1: memref<1x4xf32, #tpu.memory_space<vmem>>, %arg2: memref<1x1xf32, #tpu.memory_space<smem>>) attributes {dimension_semantics = [], scalar_prefetch = 0 : i64, scratch_operands = 0 : i64, tpu.core_type = #tpu.core_type<tc>} {
    %c0 = arith.constant 0 : index
    %c0_0 = arith.constant 0 : index
    %0 = vector.load %arg0[%c0, %c0_0] : memref<1x4xf32, #tpu.memory_space<vmem>>, vector<1x4xf32>
    %c0_1 = arith.constant 0 : index
    %c0_2 = arith.constant 0 : index
    %1 = vector.load %arg1[%c0_1, %c0_2] : memref<1x4xf32, #tpu.memory_space<vmem>>, vector<1x4xf32>
    %2 = arith.mulf %1, %1 : vector<1x4xf32>
    %cst = arith.constant 2.000000e+00 : f32
    %3 = vector.broadcast %cst : f32 to vector<1x4xf32>
    %4 = arith.mulf %3, %2 : vector<1x4xf32>
    %5 = tpu.reciprocal %4 : vector<1x4xf32> -> vector<1x4xf32>
    %6 = arith.mulf %0, %5 : vector<1x4xf32>
    %7 = math.log1p %2 : vector<1x4xf32>
    %8 = arith.addf %6, %7 : vector<1x4xf32>
    %9 = vector.shape_cast %8 : vector<1x4xf32> to vector<1x1x4xf32>
    %cst_3 = arith.constant dense<0.000000e+00> : vector<1xf32>
    %10 = vector.multi_reduction <add>, %9, %cst_3 [1, 2] : vector<1x1x4xf32> to vector<1xf32>
    %11 = vector.shape_cast %10 : vector<1xf32> to vector<1x1x1xf32>
    %12 = vector.extract %11[0, 0, 0] : f32 from vector<1x1x1xf32>
    %c0_4 = arith.constant 0 : index
    %c0_5 = arith.constant 0 : index
    %13 = memref.load %arg2[%c0_4, %c0_5] : memref<1x1xf32, #tpu.memory_space<smem>>
    memref.store %12, %arg2[%c0_4, %c0_5] : memref<1x1xf32, #tpu.memory_space<smem>>
    return
  }
}

</mosaic_0001>

<bundles_post_ra>
// kernel: uncertainty_weighted.1
= control target key start
LH: loop header
LB: loop body
LE: loop exit
PB: predicated region body
PF: predicated region fallthrough
CT: control target
= control target key end

     0   :  { %s96_s0 = inlined_call_operand.vmem [shape: f32[1,4], index: 0, kind: input, shape index: {}]   ;;  %s97_s1 = inlined_call_operand.vmem [shape: f32[1,4], index: 1, kind: input, shape index: {}]   ;;  %s98_s2 = inlined_call_operand.hbm [shape: f32[1,1], index: 2, kind: output, shape index: {}]  }
   0x1   :  { %v13_v0 = vld [vmem:[%s97_s1] sm:$0x1] }
   0x2   :  { %v14_v1 = vmul.f32 %v13_v0, %v13_v0 }
   0x3   :  { %7 = vsyncpa [#allocation3], 0  ;;  %v12_v7 = vld [vmem:[%s96_s0] sm:$0x1]  ;;  %vm28_vm1 = vcmask 24576   ;;  %s71_s1 = smov [#allocation2]  }
   0x4   :  { %v15_v2 = vmul.f32 2.0, %v14_v1  ;;  %v18_v3 = vadd.f32 1.0, %v14_v1  ;;  %v21_v4 = vmul.f32 -0.5, %v14_v1  ;;  %v24_v6 = vand.u32 2147483647, %v14_v1 }
   0x6   :  { %57 = vrcp.f32 %v15_v2  ;;  %v22_v5 = vadd.f32 1.0, %v21_v4  ;;  %vm25_vm0 = vcmp.lt.f32.partialorder %v24_v6, 0.0004427343 }
   0x7   :  { %59 = vlog2.f32 %v18_v3 }
   0x8   :  { %v23_v9 = vmul.f32 %v22_v5, %v14_v1 }
  0x13   :  { %v58_v8 = vpop.eup %57 }
  0x14   :  { %v60_v10 = vpop.eup %59  ;;  %v17_v11 = vmul.f32 %v58_v8, %v12_v7 }
  0x15   :  { %v20_v12 = vmul.f32 0.6931472, %v60_v10 }
  0x17   :  { %v26_v13 = vsel %vm25_vm0, %v23_v9, %v20_v12 }
  0x18   :  { %v27_v14 = vadd.f32 %v26_v13, %v17_v11 }
  0x1a   :  { %v29_v15 = vsel %vm28_vm1, %v27_v14, 0.0 }
  0x1b   :  { %30 = vadd.xlane.f32.xlu0 %v29_v15 }
  0xa4   :  { %v31_v16 = vpop.xlane.xlu0 %30 }
  0xa5   :  { %v32_v17 = vrot.slane %v31_v16, 4 }
  0xa7   :  { %v33_v18 = vadd.f32 %v32_v17, %v31_v16 }
  0xa9   :  { %v34_v19 = vrot.slane %v33_v18, 2 }
  0xab   :  { %v35_v20 = vadd.f32 %v34_v19, %v33_v18 }
  0xad   :  { %v36_v21 = vrot.slane %v35_v20, 1 }
  0xaf   :  { %v37_v22 = vadd.f32 %v36_v21, %v35_v20 }
  0xb1   :  { %54 = vpush %v37_v22 }
  0xe2   :  { %s55_s0 = spop %54 }
  0xe3   :  { %40 = sst [smem:[#allocation2]] %s55_s0 }
  0xe4   :  { %48 = dma.smem_to_hbm %s71_s1, 16, %s98_s2, [#allocation3]  }
  0xe5   :  { %69 = dma.done.wait [#allocation3], 16  }
  0xe6   :  { %70 = vsyncadd [#allocation3], 4294967280 }
  0xe7   :  { %52 = sfence }
  0xe8   :  { %53 = vsyncpa [#allocation3], 1 }

</bundles_post_ra>
